<compile_context>
chip_gen: v5e
topology: v5e:2x2
jax: 0.10.0
libtpu: 0.0.40
codegen_flags: <defaults>
</compile_context>

<pallas_src>
import functools

import jax
import jax.numpy as jnp
import numpy as np
from jax import lax
from jax.experimental import pallas as pl
from jax.experimental.pallas import tpu as pltpu

DIFFUSION_STEPS = 100
POINTS = 100          # feature dimension of the signal
CORE_SIZE = 100
NEG_SLOPE = 0.01      # nn.LeakyReLU default

D_PAD = 128           # lane-dense padded feature width
EMB_PAD = 128         # padded row count of the (fused) embedding table


def _leaky_relu(x):
    return jnp.where(x > 0, x, NEG_SLOPE * x)


def _pad2(a, rows, cols):
    return jnp.pad(a, ((0, rows - a.shape[0]), (0, cols - a.shape[1])))


# --------------------------------------------------------------------------- #
# Kernel
# --------------------------------------------------------------------------- #
def net_kernel(x_ref, step_ref,
               w1_ref, b1_ref, w23_ref, embt_ref, w4_ref, b4_ref,
               o_ref):
    """Fused forward for one (TB, 128) batch tile; weights stay VMEM-resident."""
    tb = x_ref.shape[0]

    # Layer 1: leaky(x @ w1 + b1)      -- bf16 MXU operands, f32 accumulate
    h = jnp.dot(x_ref[...].astype(jnp.bfloat16), w1_ref[...],
                preferred_element_type=jnp.float32) + b1_ref[...]
    h = _leaky_relu(h)

    # Embedding row gather as a one-hot matmul on the MXU.
    # embt already contains emb_table @ w3 + (b2 @ w3 + b3), i.e. the fused
    # bias is folded into every row.
    onehot = (step_ref[...] ==
              lax.broadcasted_iota(jnp.int32, (tb, EMB_PAD), 1)
              ).astype(jnp.bfloat16)
    emb = jnp.dot(onehot, embt_ref[...], preferred_element_type=jnp.float32)

    # Collapsed middle layers: leaky(h @ (w2@w3) + emb_fused[step])
    h = jnp.dot(h.astype(jnp.bfloat16), w23_ref[...],
                preferred_element_type=jnp.float32) + emb
    h = _leaky_relu(h)

    # Final layer: h @ w4 + b4   (no activation)
    out = jnp.dot(h.astype(jnp.bfloat16), w4_ref[...],
                  preferred_element_type=jnp.float32) + b4_ref[...]
    o_ref[...] = out.astype(o_ref.dtype)


# --------------------------------------------------------------------------- #
# Wrapper
# --------------------------------------------------------------------------- #
@functools.partial(jax.jit, static_argnames=("tb",))
def net_forward(x, step, kparams, *, tb=256):
    B = x.shape[0]
    # Batch padded to a multiple of 16 (safe for bf16 sublane packing), then
    # to a multiple of the batch tile size.
    b16 = -(-B // 16) * 16
    TB = min(tb, b16)
    B_pad = -(-b16 // TB) * TB

    x_p = jnp.pad(x, ((0, B_pad - B), (0, D_PAD - POINTS)))
    step_p = jnp.pad(step.astype(jnp.int32), (0, B_pad - B)).reshape(B_pad, 1)

    row_spec = pl.BlockSpec((TB, D_PAD), lambda i: (i, 0))
    step_spec = pl.BlockSpec((TB, 1), lambda i: (i, 0))
    w_spec = pl.BlockSpec((D_PAD, D_PAD), lambda i: (0, 0))   # VMEM-resident
    b_spec = pl.BlockSpec((1, D_PAD), lambda i: (0, 0))

    out = pl.pallas_call(
        net_kernel,
        out_shape=jax.ShapeDtypeStruct((B_pad, D_PAD), jnp.float32),
        grid=(B_pad // TB,),
        in_specs=[row_spec, step_spec,
                  w_spec, b_spec, w_spec, w_spec, w_spec, b_spec],
        out_specs=row_spec,
        compiler_params=pltpu.CompilerParams(
            dimension_semantics=("parallel",)),
    )(x_p, step_p,
      kparams["w1"], kparams["b1"], kparams["w23"],
      kparams["embt"], kparams["w4"], kparams["b4"])

    return out[:B, :POINTS]


# --------------------------------------------------------------------------- #
# Parameters
# --------------------------------------------------------------------------- #
def init_params(key):
    """Torch-style init: U(-1/sqrt(fan_in), 1/sqrt(fan_in)); Embedding ~ N(0,1)."""
    ks = jax.random.split(key, 9)

    def linear(kw, kb, fan_in, fan_out):
        bound = 1.0 / np.sqrt(fan_in)
        w = jax.random.uniform(kw, (fan_in, fan_out), jnp.float32, -bound, bound)
        b = jax.random.uniform(kb, (1, fan_out), jnp.float32, -bound, bound)
        return w, b

    w1, b1 = linear(ks[0], ks[1], POINTS, 100)
    w2, b2 = linear(ks[2], ks[3], 100, CORE_SIZE)
    w3, b3 = linear(ks[4], ks[5], CORE_SIZE, 100)
    w4, b4 = linear(ks[6], ks[7], 100, POINTS)
    emb_table = jax.random.normal(ks[8], (DIFFUSION_STEPS, CORE_SIZE), jnp.float32)
    return dict(w1=w1, b1=b1, w2=w2, b2=b2, w3=w3, b3=b3, w4=w4, b4=b4,
                emb_table=emb_table)


def prepare_params(params):
    """One-time precompute: lane-pad to 128, collapse w2@w3, fold biases +
    embedding projection, cast MXU operands to bf16 (f32 accumulation in-kernel)."""
    w1, b1 = params["w1"], params["b1"]
    w2, b2 = params["w2"], params["b2"]
    w3, b3 = params["w3"], params["b3"]
    w4, b4 = params["w4"], params["b4"]
    emb = params["emb_table"]

    w23 = w2 @ w3                                   # no nonlinearity between them
    emb_fused = emb @ w3 + (b2 @ w3 + b3)           # per-step row with b2,b3 folded

    return dict(
        w1=_pad2(w1, D_PAD, D_PAD).astype(jnp.bfloat16),
        b1=_pad2(b1, 1, D_PAD),                     # f32 (element-wise add)
        w23=_pad2(w23, D_PAD, D_PAD).astype(jnp.bfloat16),
        embt=_pad2(emb_fused, EMB_PAD, D_PAD).astype(jnp.bfloat16),
        w4=_pad2(w4, D_PAD, D_PAD).astype(jnp.bfloat16),
        b4=_pad2(b4, 1, D_PAD),
    )


# --------------------------------------------------------------------------- #
# References
# --------------------------------------------------------------------------- #
def net_reference(x, step, params):
    """Exact f32, unfused PyTorch-module semantics."""
    h = _leaky_relu(x @ params["w1"] + params["b1"])
    h = h @ params["w2"] + params["b2"]
    h = h + params["emb_table"][step]
    h = _leaky_relu(h @ params["w3"] + params["b3"])
    h = h @ params["w4"] + params["b4"]
    return h


def net_reference_fused(x, step, kp):
    """Pure-JAX replica of the fused/padded bf16 kernel math (tight check)."""
    xp = jnp.pad(x, ((0, 0), (0, D_PAD - POINTS)))
    h = jnp.dot(xp.astype(jnp.bfloat16), kp["w1"],
                preferred_element_type=jnp.float32) + kp["b1"]
    h = _leaky_relu(h)
    emb = kp["embt"][step].astype(jnp.float32)
    h = jnp.dot(h.astype(jnp.bfloat16), kp["w23"],
                preferred_element_type=jnp.float32) + emb
    h = _leaky_relu(h)
    out = jnp.dot(h.astype(jnp.bfloat16), kp["w4"],
                  preferred_element_type=jnp.float32) + kp["b4"]
    return out[:, :POINTS]


# --------------------------------------------------------------------------- #
if __name__ == "__main__":
    key = jax.random.PRNGKey(0)
    k_x, k_s, k_p = jax.random.split(key, 3)

    B = 8
    x = jax.random.normal(k_x, (B, POINTS), jnp.float32)                 # noisy batch
    step = jax.random.randint(k_s, (B,), 0, DIFFUSION_STEPS, jnp.int32)  # step ids
    params = init_params(k_p)
    kparams = prepare_params(params)

    out = net_forward(x, step, kparams)
    out = jax.block_until_ready(out)

    # Tight check: kernel vs. a pure-JAX replica of the same fused bf16 math.
    ref_fused = net_reference_fused(x, step, kparams)
    np.testing.assert_allclose(np.asarray(out), np.asarray(ref_fused),
                               rtol=1e-5, atol=1e-5)

    # Semantics check: vs. exact f32 module math (difference is only bf16
    # operand quantization + fp32 reassociation of the w2@w3 fusion).
    ref = net_reference(x, step, params)
    np.testing.assert_allclose(np.asarray(out), np.asarray(ref),
                               rtol=5e-2, atol=5e-2)

    print("KERNEL_OK")
</pallas_src>

<mosaic_0001>
module attributes {stable_mosaic.version = 11 : i64} {
  func.func @net_kernel(%arg0: i32, %arg1: memref<16x128xf32, #tpu.memory_space<vmem>>, %arg2: memref<16x1xi32, #tpu.memory_space<vmem>>, %arg3: memref<128x128xbf16, #tpu.memory_space<vmem>>, %arg4: memref<1x128xf32, #tpu.memory_space<vmem>>, %arg5: memref<128x128xbf16, #tpu.memory_space<vmem>>, %arg6: memref<128x128xbf16, #tpu.memory_space<vmem>>, %arg7: memref<128x128xbf16, #tpu.memory_space<vmem>>, %arg8: memref<1x128xf32, #tpu.memory_space<vmem>>, %arg9: memref<16x128xf32, #tpu.memory_space<vmem>>) attributes {dimension_semantics = [#tpu.dimension_semantics<parallel>], iteration_bounds = array<i64: 1>, scalar_prefetch = 0 : i64, scratch_operands = 0 : i64, tpu.core_type = #tpu.core_type<tc>, window_params = [{transform_indices = @transform_0, window_bounds = array<i64: 16, 128>}, {transform_indices = @transform_1, window_bounds = array<i64: 16, 1>}, {pipeline_mode = #tpu.pipeline_mode<synchronous>, transform_indices = @transform_2, window_bounds = array<i64: 128, 128>}, {pipeline_mode = #tpu.pipeline_mode<synchronous>, transform_indices = @transform_3, window_bounds = array<i64: 1, 128>}, {pipeline_mode = #tpu.pipeline_mode<synchronous>, transform_indices = @transform_4, window_bounds = array<i64: 128, 128>}, {pipeline_mode = #tpu.pipeline_mode<synchronous>, transform_indices = @transform_5, window_bounds = array<i64: 128, 128>}, {pipeline_mode = #tpu.pipeline_mode<synchronous>, transform_indices = @transform_6, window_bounds = array<i64: 128, 128>}, {pipeline_mode = #tpu.pipeline_mode<synchronous>, transform_indices = @transform_7, window_bounds = array<i64: 1, 128>}, {transform_indices = @transform_8, window_bounds = array<i64: 16, 128>}]} {
    %c0 = arith.constant 0 : index
    %c0_0 = arith.constant 0 : index
    %0 = vector.load %arg1[%c0, %c0_0] : memref<16x128xf32, #tpu.memory_space<vmem>>, vector<16x128xf32>
    %1 = arith.truncf %0 : vector<16x128xf32> to vector<16x128xbf16>
    %c0_1 = arith.constant 0 : index
    %c0_2 = arith.constant 0 : index
    %2 = vector.load %arg3[%c0_1, %c0_2] : memref<128x128xbf16, #tpu.memory_space<vmem>>, vector<128x128xbf16>
    %cst = arith.constant dense<0.000000e+00> : vector<16x128xf32>
    %3 = tpu.matmul %1, %2, %cst {dimension_numbers = #tpu.dot_dimension_numbers<[1], [0], [0], [1], [0, 0, 1, 1], [], []>} : vector<16x128xbf16>, vector<128x128xbf16>, vector<16x128xf32> -> vector<16x128xf32>
    %c0_3 = arith.constant 0 : index
    %c0_4 = arith.constant 0 : index
    %4 = vector.load %arg4[%c0_3, %c0_4] : memref<1x128xf32, #tpu.memory_space<vmem>>, vector<1x128xf32>
    %5 = vector.broadcast %4 : vector<1x128xf32> to vector<16x128xf32>
    %6 = arith.addf %3, %5 : vector<16x128xf32>
    %cst_5 = arith.constant 0.000000e+00 : f32
    %7 = vector.broadcast %cst_5 : f32 to vector<16x128xf32>
    %8 = arith.cmpf ogt, %6, %7 : vector<16x128xf32>
    %cst_6 = arith.constant 0.00999999977 : f32
    %9 = vector.broadcast %cst_6 : f32 to vector<16x128xf32>
    %10 = arith.mulf %9, %6 : vector<16x128xf32>
    %11 = arith.select %8, %6, %10 : vector<16x128xi1>, vector<16x128xf32>
    %c0_7 = arith.constant 0 : index
    %c0_8 = arith.constant 0 : index
    %12 = vector.load %arg2[%c0_7, %c0_8] : memref<16x1xi32, #tpu.memory_space<vmem>>, vector<16x1xi32>
    %13 = tpu.iota {dimensions = array<i32: 1>} : vector<16x128xi32>
    %14 = vector.broadcast %12 : vector<16x1xi32> to vector<16x128xi32>
    %15 = arith.cmpi eq, %14, %13 : vector<16x128xi32>
    %16 = arith.extui %15 : vector<16x128xi1> to vector<16x128xi32>
    %17 = arith.sitofp %16 : vector<16x128xi32> to vector<16x128xf32>
    %18 = arith.truncf %17 : vector<16x128xf32> to vector<16x128xbf16>
    %c0_9 = arith.constant 0 : index
    %c0_10 = arith.constant 0 : index
    %19 = vector.load %arg6[%c0_9, %c0_10] : memref<128x128xbf16, #tpu.memory_space<vmem>>, vector<128x128xbf16>
    %cst_11 = arith.constant dense<0.000000e+00> : vector<16x128xf32>
    %20 = tpu.matmul %18, %19, %cst_11 {dimension_numbers = #tpu.dot_dimension_numbers<[1], [0], [0], [1], [0, 0, 1, 1], [], []>} : vector<16x128xbf16>, vector<128x128xbf16>, vector<16x128xf32> -> vector<16x128xf32>
    %21 = arith.truncf %11 : vector<16x128xf32> to vector<16x128xbf16>
    %c0_12 = arith.constant 0 : index
    %c0_13 = arith.constant 0 : index
    %22 = vector.load %arg5[%c0_12, %c0_13] : memref<128x128xbf16, #tpu.memory_space<vmem>>, vector<128x128xbf16>
    %cst_14 = arith.constant dense<0.000000e+00> : vector<16x128xf32>
    %23 = tpu.matmul %21, %22, %cst_14 {dimension_numbers = #tpu.dot_dimension_numbers<[1], [0], [0], [1], [0, 0, 1, 1], [], []>} : vector<16x128xbf16>, vector<128x128xbf16>, vector<16x128xf32> -> vector<16x128xf32>
    %24 = arith.addf %23, %20 : vector<16x128xf32>
    %cst_15 = arith.constant 0.000000e+00 : f32
    %25 = vector.broadcast %cst_15 : f32 to vector<16x128xf32>
    %26 = arith.cmpf ogt, %24, %25 : vector<16x128xf32>
    %cst_16 = arith.constant 0.00999999977 : f32
    %27 = vector.broadcast %cst_16 : f32 to vector<16x128xf32>
    %28 = arith.mulf %27, %24 : vector<16x128xf32>
    %29 = arith.select %26, %24, %28 : vector<16x128xi1>, vector<16x128xf32>
    %30 = arith.truncf %29 : vector<16x128xf32> to vector<16x128xbf16>
    %c0_17 = arith.constant 0 : index
    %c0_18 = arith.constant 0 : index
    %31 = vector.load %arg7[%c0_17, %c0_18] : memref<128x128xbf16, #tpu.memory_space<vmem>>, vector<128x128xbf16>
    %cst_19 = arith.constant dense<0.000000e+00> : vector<16x128xf32>
    %32 = tpu.matmul %30, %31, %cst_19 {dimension_numbers = #tpu.dot_dimension_numbers<[1], [0], [0], [1], [0, 0, 1, 1], [], []>} : vector<16x128xbf16>, vector<128x128xbf16>, vector<16x128xf32> -> vector<16x128xf32>
    %c0_20 = arith.constant 0 : index
    %c0_21 = arith.constant 0 : index
    %33 = vector.load %arg8[%c0_20, %c0_21] : memref<1x128xf32, #tpu.memory_space<vmem>>, vector<1x128xf32>
    %34 = vector.broadcast %33 : vector<1x128xf32> to vector<16x128xf32>
    %35 = arith.addf %32, %34 : vector<16x128xf32>
    %c0_22 = arith.constant 0 : index
    %c0_23 = arith.constant 0 : index
    %36 = vector.load %arg9[%c0_22, %c0_23] : memref<16x128xf32, #tpu.memory_space<vmem>>, vector<16x128xf32>
    tpu.vector_store %arg9[%c0_22, %c0_23], %35 {strides = array<i32>} : memref<16x128xf32, #tpu.memory_space<vmem>>, vector<16x128xf32>,
    return
  }
  func.func @transform_0(%arg0: i32) -> (i32, i32) {
    %c0_i32 = arith.constant 0 : i32
    %c0_i32_0 = arith.constant 0 : i32
    return %arg0, %c0_i32 : i32, i32
  }
  func.func @transform_1(%arg0: i32) -> (i32, i32) {
    %c0_i32 = arith.constant 0 : i32
    %c0_i32_0 = arith.constant 0 : i32
    return %arg0, %c0_i32 : i32, i32
  }
  func.func @transform_2(%arg0: i32) -> (i32, i32) {
    %c0_i32 = arith.constant 0 : i32
    %c0_i32_0 = arith.constant 0 : i32
    %c0_i32_1 = arith.constant 0 : i32
    return %c0_i32, %c0_i32_0 : i32, i32
  }
  func.func @transform_3(%arg0: i32) -> (i32, i32) {
    %c0_i32 = arith.constant 0 : i32
    %c0_i32_0 = arith.constant 0 : i32
    %c0_i32_1 = arith.constant 0 : i32
    return %c0_i32, %c0_i32_0 : i32, i32
  }
  func.func @transform_4(%arg0: i32) -> (i32, i32) {
    %c0_i32 = arith.constant 0 : i32
    %c0_i32_0 = arith.constant 0 : i32
    %c0_i32_1 = arith.constant 0 : i32
    return %c0_i32, %c0_i32_0 : i32, i32
  }
  func.func @transform_5(%arg0: i32) -> (i32, i32) {
    %c0_i32 = arith.constant 0 : i32
    %c0_i32_0 = arith.constant 0 : i32
    %c0_i32_1 = arith.constant 0 : i32
    return %c0_i32, %c0_i32_0 : i32, i32
  }
  func.func @transform_6(%arg0: i32) -> (i32, i32) {
    %c0_i32 = arith.constant 0 : i32
    %c0_i32_0 = arith.constant 0 : i32
    %c0_i32_1 = arith.constant 0 : i32
    return %c0_i32, %c0_i32_0 : i32, i32
  }
  func.func @transform_7(%arg0: i32) -> (i32, i32) {
    %c0_i32 = arith.constant 0 : i32
    %c0_i32_0 = arith.constant 0 : i32
    %c0_i32_1 = arith.constant 0 : i32
    return %c0_i32, %c0_i32_0 : i32, i32
  }
  func.func @transform_8(%arg0: i32) -> (i32, i32) {
    %c0_i32 = arith.constant 0 : i32
    %c0_i32_0 = arith.constant 0 : i32
    return %arg0, %c0_i32 : i32, i32
  }
}

</mosaic_0001>

<bundles_post_ra>
// kernel: net_forward.1
= control target key start
LH: loop header
LB: loop body
LE: loop exit
PB: predicated region body
PF: predicated region fallthrough
CT: control target
= control target key end

     0   :  { %13 = vsyncpa [#allocation3], 0  ;;  %s821_s0 = inlined_call_operand.vmem [shape: f32[16,128], index: 0, kind: input, shape index: {}]   ;;  %s822_s1 = inlined_call_operand.vmem [shape: s32[16,1], index: 1, kind: input, shape index: {}]   ;;  %s823_s2 = inlined_call_operand.hbm [shape: bf16[128,128], index: 2, kind: input, shape index: {}]   ;;  %s824_s3 = inlined_call_operand.vmem [shape: f32[1,128], index: 3, kind: input, shape index: {}]   ;;  %s825_s4 = inlined_call_operand.hbm [shape: bf16[128,128], index: 4, kind: input, shape index: {}]   ;;  %s826_s5 = inlined_call_operand.hbm [shape: bf16[128,128], index: 5, kind: input, shape index: {}]   ;;  %s827_s6 = inlined_call_operand.hbm [shape: bf16[128,128], index: 6, kind: input, shape index: {}]   ;;  %s828_s7 = inlined_call_operand.vmem [shape: f32[1,128], index: 7, kind: input, shape index: {}]   ;;  %s829_s8 = inlined_call_operand.vmem [shape: f32[16,128], index: 8, kind: output, shape index: {}]  }
   0x1   :  { %14 = vsyncpa [#allocation5], 0 }
   0x2   :  { %15 = vsyncpa [#allocation8], 0  ;;  %s39_s29 = sshll.u32 %s825_s4, 4  ;;  %s732_s30 = smov [#allocation4]   ;;  %s40_s29 = int_to_ptr.hbm [resolvable:$true] %s39_s29 }
   0x3   :  { %s41_s9 = sshll.u32 %s732_s30, 4  ;;  %s24_s12 = sshll.u32 %s823_s2, 4  ;;  %s42_s9 = int_to_ptr.vmem [resolvable:$true] %s41_s9  ;;  %s25_s12 = int_to_ptr.hbm [resolvable:$true] %s24_s12 }
   0x4   :  { %s733_s13 = smov 64   ;;  %s734_s14 = smov 4  }
   0x5   :  { %47 = dma.hbm_to_vmem [thread:$0]  %s40_s29, 1024, %s42_s9, [#allocation5], %s733_s13, %s733_s13, %s734_s14  }
   0x6   :  { %s735_s15 = smov [#allocation2]   ;;  %s52_s19 = sshll.u32 %s826_s5, 4  ;;  %s53_s19 = int_to_ptr.hbm [resolvable:$true] %s52_s19 }
   0x7   :  { %s26_s16 = sshll.u32 %s735_s15, 4  ;;  %s65_s21 = sshll.u32 %s827_s6, 4  ;;  %s27_s16 = int_to_ptr.vmem [resolvable:$true] %s26_s16  ;;  %s66_s21 = int_to_ptr.hbm [resolvable:$true] %s65_s21 }
   0x8   :  { %32 = dma.hbm_to_vmem [thread:$0]  %s25_s12, 1024, %s27_s16, [#allocation3], %s733_s13, %s733_s13, %s734_s14  }
   0x9   :  { %s736_s22 = smov [#allocation6]   ;;  %s737_s2 = smov [#allocation7]  }
   0xa   :  { %s54_s23 = sshll.u32 %s736_s22, 4  ;;  %s67_s24 = sshll.u32 %s737_s2, 4  ;;  %s55_s23 = int_to_ptr.vmem [resolvable:$true] %s54_s23  ;;  %s68_s24 = int_to_ptr.vmem [resolvable:$true] %s67_s24 }
   0xb   :  { %60 = dma.hbm_to_vmem [thread:$0]  %s53_s19, 1024, %s55_s23, [#allocation5], %s733_s13, %s733_s13, %s734_s14  }
   0xc   :  { %73 = dma.hbm_to_vmem [thread:$0]  %s66_s21, 1024, %s68_s24, [#allocation8], %s733_s13, %s733_s13, %s734_s14  }
   0xd   :  { %726 = dma.done.wait [#allocation3], 1024  }
   0xe   :  { %727 = vsyncadd [#allocation3], 4294966272 }
   0xf   :  { %728 = dma.done.wait [#allocation5], 2048  }
  0x10   :  { %729 = vsyncadd [#allocation5], 4294965248 }
  0x11   :  { %730 = dma.done.wait [#allocation8], 1024  }
  0x12   :  { %731 = vsyncadd [#allocation8], 4294966272  ;;  %v594_v0 = vld [vmem:[#allocation2 + $0x38] sm:$0xff]  ;;  %v593_v1 = vld [vmem:[#allocation2 + $0x30] sm:$0xff]  ;;  %v738_v2 = vmov 0   ;;  %v185_v26 = vlaneseq }
  0x13   :  { %163 = vmatpush.bf16.msra.mxu0 %v594_v0  ;;  %627 = vset.pattern.permute.xlu0 %v738_v2  ;;  %v183_v3 = vld [vmem:[%s822_s1] sm:$0xff]  ;;  %v602_v4 = vld [vmem:[#allocation6 + $0x38] sm:$0xff]  ;;  %v592_v6 = vld [vmem:[#allocation2 + $0x28] sm:$0xff]  ;;  %v739_v32 = vmov 1.0|1.0  }
  0x14   :  { %188 = vperm.xlu0 %627, %v183_v3   ;;  %v610_v5 = vld [vmem:[#allocation4 + $0x38] sm:$0xff]  ;;  %264 = vmatpush.bf16.msra.mxu1 %v602_v4  ;;  %v601_v7 = vld [vmem:[#allocation6 + $0x30] sm:$0xff]  ;;  %v184_v9 = vld [vmem:[%s822_s1 + $0x8] sm:$0xff]  ;;  %v186_v27 = vand.u32 127, %v185_v26 }
  0x15   :  { %343 = vmatpush.bf16.msra.mxu2 %v610_v5  ;;  %v609_v8 = vld [vmem:[#allocation4 + $0x30] sm:$0xff]  ;;  %v591_v10 = vld [vmem:[#allocation2 + $0x20] sm:$0xff]  ;;  %v600_v11 = vld [vmem:[#allocation6 + $0x28] sm:$0xff] }
  0x16   :  { %v608_v12 = vld [vmem:[#allocation4 + $0x28] sm:$0xff]  ;;  %v590_v13 = vld [vmem:[#allocation2 + $0x18] sm:$0xff]  ;;  %v599_v14 = vld [vmem:[#allocation6 + $0x20] sm:$0xff] }
  0x17   :  { %164 = vmatpush.bf16.msra.mxu0 %v593_v1  ;;  %v589_v15 = vld [vmem:[#allocation2 + $0x10] sm:$0xff]  ;;  %v598_v16 = vld [vmem:[#allocation6 + $0x18] sm:$0xff]  ;;  %v588_v17 = vld [vmem:[#allocation2 + $0x8] sm:$0xff] }
  0x18   :  { %265 = vmatpush.bf16.msra.mxu1 %v601_v7  ;;  %v597_v18 = vld [vmem:[#allocation6 + $0x10] sm:$0xff]  ;;  %v587_v19 = vld [vmem:[#allocation2] sm:$0xff]  ;;  %v93_v21 = vld [vmem:[%s821_s0 + $0x8] sm:$0xff] }
  0x19   :  { %344 = vmatpush.bf16.msra.mxu2 %v609_v8  ;;  %v92_v20 = vld [vmem:[%s821_s0] sm:$0xff]  ;;  %v596_v24 = vld [vmem:[#allocation6 + $0x8] sm:$0xff]  ;;  %v606_v28 = vld [vmem:[#allocation4 + $0x18] sm:$0xff] }
  0x1a   :  { %v94_v22 = vpack.c.bf16 %v93_v21, %v92_v20  ;;  %v607_v23 = vld [vmem:[#allocation4 + $0x20] sm:$0xff]  ;;  %v605_v31 = vld [vmem:[#allocation4 + $0x10] sm:$0xff]  ;;  %v604_v33 = vld [vmem:[#allocation4 + $0x8] sm:$0xff] }
  0x1b   :  { %165 = vmatpush.bf16.msra.mxu0 %v592_v6  ;;  %v595_v29 = vld [vmem:[#allocation6] sm:$0xff]  ;;  %v618_v45 = vld [vmem:[#allocation7 + $0x38] sm:$0xff]  ;;  %v617_v46 = vld [vmem:[#allocation7 + $0x30] sm:$0xff] }
  0x1c   :  { %191 = vperm.xlu0 %627, %v184_v9   ;;  %266 = vmatpush.bf16.msra.mxu1 %v600_v11  ;;  %v603_v34 = vld [vmem:[#allocation4] sm:$0xff]  ;;  %v616_v47 = vld [vmem:[#allocation7 + $0x28] sm:$0xff]  ;;  %v614_v49 = vld [vmem:[#allocation7 + $0x18] sm:$0xff] }
  0x1d   :  { %345 = vmatpush.bf16.msra.mxu2 %v608_v12  ;;  %v628_v36 = vld [vmem:[%s824_s3] ss:$0 sm:$0xff]  ;;  %432 = vmatpush.bf16.msra.mxu3 %v618_v45  ;;  %v613_v50 = vld [vmem:[#allocation7 + $0x10] sm:$0xff]  ;;  %v612_v51 = vld [vmem:[#allocation7 + $0x8] sm:$0xff] }
  0x1e   :  { %v615_v48 = vld [vmem:[#allocation7 + $0x20] sm:$0xff] }
  0x1f   :  { %166 = vmatpush.bf16.msra.mxu0 %v591_v10  ;;  %v611_v52 = vld [vmem:[#allocation7] sm:$0xff] }
  0x20   :  { %267 = vmatpush.bf16.msra.mxu1 %v599_v14  ;;  %v629_v0 = vld [vmem:[%s828_s7] ss:$0 sm:$0xff] }
  0x21   :  { %346 = vmatpush.bf16.msra.mxu2 %v607_v23  ;;  %433 = vmatpush.bf16.msra.mxu3 %v617_v46 }
  0x23   :  { %167 = vmatpush.bf16.msra.mxu0 %v590_v13 }
  0x24   :  { %268 = vmatpush.bf16.msra.mxu1 %v598_v16 }
  0x25   :  { %347 = vmatpush.bf16.msra.mxu2 %v606_v28  ;;  %434 = vmatpush.bf16.msra.mxu3 %v616_v47 }
  0x27   :  { %168 = vmatpush.bf16.msra.mxu0 %v589_v15 }
  0x28   :  { %269 = vmatpush.bf16.msra.mxu1 %v597_v18 }
  0x29   :  { %348 = vmatpush.bf16.msra.mxu2 %v605_v31  ;;  %435 = vmatpush.bf16.msra.mxu3 %v615_v48 }
  0x2b   :  { %169 = vmatpush.bf16.msra.mxu0 %v588_v17 }
  0x2c   :  { %270 = vmatpush.bf16.msra.mxu1 %v596_v24 }
  0x2d   :  { %349 = vmatpush.bf16.msra.mxu2 %v604_v33  ;;  %436 = vmatpush.bf16.msra.mxu3 %v614_v49 }
  0x2f   :  { %170 = vmatpush.bf16.msra.mxu0 %v587_v19 }
  0x30   :  { %271 = vmatpush.bf16.msra.mxu1 %v595_v29 }
  0x31   :  { %350 = vmatpush.bf16.msra.mxu2 %v603_v34  ;;  %437 = vmatpush.bf16.msra.mxu3 %v613_v50 }
  0x32   :  { %171 = vmatmul.bf16.vlgmr.msra.gmra.mxu0 %v94_v22 }
  0x35   :  { %438 = vmatpush.bf16.msra.mxu3 %v612_v51 }
  0x39   :  { %439 = vmatpush.bf16.msra.mxu3 %v611_v52 }
  0x86   :  { %v189_v25 = vpop.permute.xlu0 %188 }
  0x87   :  { %vm193_vm0 = vcmp.eq.s32.totalorder %v189_v25, %v186_v27 }
  0x8e   :  { %v192_v30 = vpop.permute.xlu0 %191 }
  0x8f   :  { %vm194_vm1 = vcmp.eq.s32.totalorder %v192_v30, %v186_v27 }
  0x90   :  { %vm521_vm2 = vmpackc.low %vm194_vm1, %vm193_vm0 }
  0x91   :  { %522 = vmatmul.msk.bf16.vlgmr.msra.gmra.mxu1 %vm521_vm2, %v739_v32 }
  0xaf   :  { %v172_v35 = vpop.f32.mrf.mxu0 }
  0xb0   :  { %v173_v37 = vadd.f32 %v628_v36, %v172_v35 }
  0xb2   :  { %v179_v39 = vmul.f32 0.01, %v173_v37  ;;  %vm177_vm3 = vcmp.gt.f32.partialorder %v173_v37, 0.0 }
  0xb4   :  { %v181_v42 = vsel %vm177_vm3, %v173_v37, %v179_v39 }
  0xb7   :  { %v174_v38 = vpop.f32.mrf.mxu0 }
  0xb8   :  { %v175_v40 = vadd.f32 %v628_v36, %v174_v38 }
  0xba   :  { %v180_v41 = vmul.f32 0.01, %v175_v40  ;;  %vm178_vm4 = vcmp.gt.f32.partialorder %v175_v40, 0.0 }
  0xbc   :  { %v182_v43 = vsel %vm178_vm4, %v175_v40, %v180_v41 }
  0xbd   :  { %v278_v44 = vpack.c.bf16 %v182_v43, %v181_v42 }
  0xbf   :  { %351 = vmatmul.bf16.vlgmr.msra.gmra.mxu2 %v278_v44 }
 0x10e   :  { %v273_v53 = vpop.f32.mrf.mxu1 }
 0x116   :  { %v275_v56 = vpop.f32.mrf.mxu1 }
 0x142   :  { %v352_v54 = vpop.f32.mrf.mxu2 }
 0x143   :  { %v353_v55 = vadd.f32 %v352_v54, %v273_v53 }
 0x145   :  { %v359_v58 = vmul.f32 0.01, %v353_v55  ;;  %vm357_vm5 = vcmp.gt.f32.partialorder %v353_v55, 0.0 }
 0x147   :  { %v361_v61 = vsel %vm357_vm5, %v353_v55, %v359_v58 }
 0x14a   :  { %v354_v57 = vpop.f32.mrf.mxu2 }
 0x14b   :  { %v355_v59 = vadd.f32 %v354_v57, %v275_v56 }
 0x14d   :  { %v360_v60 = vmul.f32 0.01, %v355_v59  ;;  %vm358_vm6 = vcmp.gt.f32.partialorder %v355_v59, 0.0 }
 0x14f   :  { %v362_v62 = vsel %vm358_vm6, %v355_v59, %v360_v60 }
 0x150   :  { %v363_v63 = vpack.c.bf16 %v362_v62, %v361_v61 }
 0x152   :  { %440 = vmatmul.bf16.vlgmr.msra.gmra.mxu3 %v363_v63 }
 0x1d5   :  { %v441_v1 = vpop.f32.mrf.mxu3 }
 0x1d6   :  { %v442_v2 = vadd.f32 %v629_v0, %v441_v1 }
 0x1d8   :  { %446 = vst [vmem:[%s829_s8] sm:$0xff] %v442_v2 }
 0x1dd   :  { %v443_v3 = vpop.f32.mrf.mxu3 }
 0x1de   :  { %v444_v4 = vadd.f32 %v629_v0, %v443_v3 }
 0x1e0   :  { %447 = vst [vmem:[%s829_s8 + $0x8] sm:$0xff] %v444_v4 }
 0x1e1   :  { %452 = vsyncpa [#allocation3], 1 }
 0x1e2   :  { %453 = vsyncpa [#allocation5], 1 }
 0x1e3   :  { %454 = vsyncpa [#allocation8], 1 }

</bundles_post_ra>
